<compile_context>
chip_gen: v7x
topology: tpu7x:2x2x1
jax: 0.10.0
libtpu: 0.0.40
codegen_flags: <defaults>
</compile_context>

<pallas_src>
import jax
import jax.numpy as jnp
from jax import lax
from jax.experimental import pallas as pl
from jax.experimental.pallas import tpu as pltpu


_NC = 256  # instance-axis chunk for the score reduction (multiple of 128)


def _round_up(v, m):
    return ((v + m - 1) // m) * m


def _choose_nc(N):
    """Chunk size along the instance axis for the score reduction."""
    return N if N <= 2 * _NC else _NC


def _vmem_capacity_bytes():
    try:
        return int(pltpu.get_tpu_info().vmem_capacity_bytes)
    except Exception:
        return 64 << 20  # conservative fallback (v7x per-core VMEM)


def _choose_tiling(B, N, H, itemsize, target_steps=4):
    """Pick the batch tile `tb` and an explicit scoped-VMEM limit.

    The footprint accounts for lane padding of H and N up to 128, sublane
    padding, the double-buffered x / out blocks, the f32 scores scratch and
    the bounded f32 chunk temporaries created in the kernel body.
    """
    H_pad = _round_up(H, 128)
    N_sub = _round_up(N, 8)
    N_lane = _round_up(N, 128)
    nc = _round_up(_choose_nc(N), 8)

    def footprint(tb):
        tb_pad = _round_up(tb, 8)
        x_blk = tb_pad * N_sub * H_pad * itemsize      # one x buffer (padded)
        out_blk = tb_pad * N_lane * itemsize           # one out buffer
        w_blk = 8 * H_pad * itemsize                   # tiny, double-buffered
        scores = tb_pad * N_lane * 4                   # f32 scratch
        temps = tb_pad * nc * H_pad * 4 + 3 * tb_pad * N_lane * 4
        return 2 * x_blk + 2 * out_blk + 2 * w_blk + scores + temps

    vmem_cap = _vmem_capacity_bytes()
    # Stay inside the smallest default scoped-VMEM limit across generations
    # (v5e ~16 MiB), with headroom.
    budget = min(12 << 20, vmem_cap // 4)

    per8 = max(1, footprint(8))
    cap = max(1, (budget * 8) // per8)                 # footprint ~linear in tb

    # Prefer a few grid steps: pipelining everywhere, 2-TC sharding on v7x.
    tb = min(cap, max(1, pl.cdiv(B, target_steps)))
    if tb >= B:
        tb = B                                         # whole batch per step
    else:
        # Batch axis is tiled -> tb must be a multiple of 8 (sublane rule);
        # the wrapper pads B up to a multiple of tb.
        tb = max(8, (tb // 8) * 8)
        if tb >= B:
            tb = B

    vmem_limit = int(footprint(tb) * 1.5) + (2 << 20)
    vmem_limit = max(vmem_limit, 16 << 20)
    vmem_limit = min(vmem_limit, vmem_cap * 3 // 4)    # leave physical headroom
    return tb, vmem_limit


def _make_kernel(N, nc):
    n_full = N // nc
    rem = N - n_full * nc

    def kernel(x_ref, w_ref, o_ref, s_ref):
        # x_ref: (tb, N, H)   w_ref: (1, H)   o_ref: (tb, N)   s_ref: (tb, N) f32
        w = w_ref[...].astype(jnp.float32)[None, :, :]          # (1, 1, H)

        if n_full <= 1 and rem == 0:
            # Single chunk: direct full-block VPU multiply + XLU lane reduce.
            x = x_ref[...].astype(jnp.float32)                  # (tb, N, H)
            s_ref[...] = jnp.sum(x * w, axis=-1)
        else:
            def score_chunk(start, size):
                xc = x_ref[:, pl.ds(start, size), :].astype(jnp.float32)
                s_ref[:, pl.ds(start, size)] = jnp.sum(xc * w, axis=-1)

            def body(c, carry):
                score_chunk(pl.multiple_of(c * nc, nc), nc)
                return carry

            lax.fori_loop(0, n_full, body, 0)
            if rem:
                score_chunk(n_full * nc, rem)                   # static tail

        # Softmax over the instance axis (dim=1), all in f32; exact divide so
        # rows sum to 1 (parity with torch.softmax).
        scores = s_ref[...]                                     # (tb, N) f32
        m = jnp.max(scores, axis=1, keepdims=True)              # (tb, 1)
        e = jnp.exp(scores - m)                                 # (tb, N)
        denom = jnp.sum(e, axis=1, keepdims=True)               # (tb, 1)
        o_ref[...] = (e / denom).astype(o_ref.dtype)

    return kernel


def attention_mechanism(x, w, b=None):
    """x: (B, N, H); w: (H, 1) or (1, H); b ignored (cancels in the softmax).

    Returns attention weights of shape (B, N, 1), matching the PyTorch module.
    """
    del b  # Linear(hidden, 1) bias is constant over N -> cancels in softmax.
    B, N, H = x.shape
    w_row = jnp.asarray(w).reshape(1, H).astype(jnp.float32)

    itemsize = jnp.dtype(x.dtype).itemsize
    tb, vmem_limit = _choose_tiling(B, N, H, itemsize)
    grid_b = pl.cdiv(B, tb)
    b_pad = grid_b * tb

    x_in = x if b_pad == B else jnp.pad(x, ((0, b_pad - B), (0, 0), (0, 0)))

    # TODO(synk): if production H is small / not 128-aligned (like the toy
    # H=32 here), fold instances so the lane axis is 128-dense to avoid 4x
    # lane-padding waste; the module default hidden_dim=512 is already aligned.

    cost = pl.CostEstimate(
        flops=2 * b_pad * N * H + 5 * b_pad * N,
        transcendentals=b_pad * N,
        bytes_accessed=(b_pad * N * H + b_pad * N) * itemsize + H * 4,
    )

    kernel = _make_kernel(N, _choose_nc(N))

    out = pl.pallas_call(
        kernel,
        out_shape=jax.ShapeDtypeStruct((b_pad, N), x.dtype),
        grid_spec=pltpu.PrefetchScalarGridSpec(
            num_scalar_prefetch=0,
            grid=(grid_b,),
            in_specs=[
                pl.BlockSpec((tb, N, H), lambda i: (i, 0, 0)),
                pl.BlockSpec((1, H), lambda i: (0, 0)),
            ],
            out_specs=pl.BlockSpec((tb, N), lambda i: (i, 0)),
            scratch_shapes=[pltpu.VMEM((tb, N), jnp.float32)],
        ),
        compiler_params=pltpu.CompilerParams(
            dimension_semantics=("parallel",),
            vmem_limit_bytes=vmem_limit,
        ),
        cost_estimate=cost,
    )(x_in, w_row)

    out = out[:B] if b_pad != B else out
    # Lane-dense (B, N) inside the kernel; restore the module's (B, N, 1).
    return out[..., None]


# TODO(synk): the `mask is not None` branch (masked_fill with -1e9 before
# softmax) is not implemented; the module's default mask=None path is covered.
# TODO(synk): bags whose single-bag footprint alone exceeds VMEM would need
# N-axis (online-softmax) tiling; not implemented.


if __name__ == "__main__":
    # Small shapes consistent with the module: batch=2, bag size (seq)=8, hidden=32
    B, N, H = 2, 8, 32
    key = jax.random.PRNGKey(0)
    kx, kw, kb = jax.random.split(key, 3)

    x = jax.random.normal(kx, (B, N, H), dtype=jnp.float32)
    # Mimic nn.Linear's uniform(-1/sqrt(H), 1/sqrt(H)) init
    bound = 1.0 / (H ** 0.5)
    w = jax.random.uniform(kw, (H, 1), minval=-bound, maxval=bound, dtype=jnp.float32)
    b = jax.random.uniform(kb, (1, 1), minval=-bound, maxval=bound, dtype=jnp.float32)

    out = attention_mechanism(x, w, b)
    out = jax.block_until_ready(out)

    # Reference in plain JAX (bias included; it cancels inside the softmax).
    ref = jax.nn.softmax(jnp.einsum("bnh,ho->bno", x, w) + b[None, :, :], axis=1)

    assert out.shape == (B, N, 1)
    # Exact f32 softmax (no approx reciprocal) -> tight tolerance.
    assert jnp.allclose(out, ref, atol=1e-5, rtol=1e-5)
    assert jnp.allclose(jnp.sum(out, axis=1), 1.0, atol=1e-5)

    print("KERNEL_OK")
</pallas_src>

<mosaic_0001>
module attributes {stable_mosaic.version = 11 : i64} {
  func.func @kernel(%arg0: i32, %arg1: memref<2x8x32xf32, #tpu.memory_space<vmem>>, %arg2: memref<1x32xf32, #tpu.memory_space<vmem>>, %arg3: memref<2x8xf32, #tpu.memory_space<vmem>>, %arg4: memref<2x8xf32, #tpu.memory_space<vmem>>) attributes {dimension_semantics = [#tpu.dimension_semantics<parallel>], iteration_bounds = array<i64: 1>, scalar_prefetch = 0 : i64, scratch_operands = 1 : i64, tpu.core_type = #tpu.core_type<tc>, window_params = [{transform_indices = @transform_0, window_bounds = array<i64: 2, 8, 32>}, {pipeline_mode = #tpu.pipeline_mode<synchronous>, transform_indices = @transform_1, window_bounds = array<i64: 1, 32>}, {transform_indices = @transform_2, window_bounds = array<i64: 2, 8>}]} {
    %c0 = arith.constant 0 : index
    %c0_0 = arith.constant 0 : index
    %0 = vector.load %arg2[%c0, %c0_0] : memref<1x32xf32, #tpu.memory_space<vmem>>, vector<1x32xf32>
    %1 = vector.shape_cast %0 : vector<1x32xf32> to vector<1x1x32xf32>
    %c0_1 = arith.constant 0 : index
    %c0_2 = arith.constant 0 : index
    %c0_3 = arith.constant 0 : index
    %2 = vector.load %arg1[%c0_1, %c0_2, %c0_3] : memref<2x8x32xf32, #tpu.memory_space<vmem>>, vector<2x8x32xf32>
    %3 = vector.broadcast %1 : vector<1x1x32xf32> to vector<2x8x32xf32>
    %4 = arith.mulf %2, %3 : vector<2x8x32xf32>
    %cst = arith.constant dense<0.000000e+00> : vector<2x8xf32>
    %5 = vector.multi_reduction <add>, %4, %cst [2] : vector<2x8x32xf32> to vector<2x8xf32>
    %c0_4 = arith.constant 0 : index
    %c0_5 = arith.constant 0 : index
    %6 = vector.load %arg4[%c0_4, %c0_5] : memref<2x8xf32, #tpu.memory_space<vmem>>, vector<2x8xf32>
    tpu.vector_store %arg4[%c0_4, %c0_5], %5 {strides = array<i32>} : memref<2x8xf32, #tpu.memory_space<vmem>>, vector<2x8xf32>,
    %c0_6 = arith.constant 0 : index
    %c0_7 = arith.constant 0 : index
    %7 = vector.load %arg4[%c0_6, %c0_7] : memref<2x8xf32, #tpu.memory_space<vmem>>, vector<2x8xf32>
    %cst_8 = arith.constant dense<0xFF800000> : vector<2xf32>
    %8 = vector.multi_reduction <maximumf>, %7, %cst_8 [1] : vector<2x8xf32> to vector<2xf32>
    %9 = vector.shape_cast %8 : vector<2xf32> to vector<2x1xf32>
    %10 = vector.broadcast %9 : vector<2x1xf32> to vector<2x8xf32>
    %11 = arith.subf %7, %10 : vector<2x8xf32>
    %12 = math.exp %11 : vector<2x8xf32>
    %cst_9 = arith.constant dense<0.000000e+00> : vector<2xf32>
    %13 = vector.multi_reduction <add>, %12, %cst_9 [1] : vector<2x8xf32> to vector<2xf32>
    %14 = vector.shape_cast %13 : vector<2xf32> to vector<2x1xf32>
    %15 = vector.broadcast %14 : vector<2x1xf32> to vector<2x8xf32>
    %16 = arith.divf %12, %15 : vector<2x8xf32>
    %c0_10 = arith.constant 0 : index
    %c0_11 = arith.constant 0 : index
    %17 = vector.load %arg3[%c0_10, %c0_11] : memref<2x8xf32, #tpu.memory_space<vmem>>, vector<2x8xf32>
    tpu.vector_store %arg3[%c0_10, %c0_11], %16 {strides = array<i32>} : memref<2x8xf32, #tpu.memory_space<vmem>>, vector<2x8xf32>,
    return
  }
  func.func @transform_0(%arg0: i32) -> (i32, i32, i32) {
    %c0_i32 = arith.constant 0 : i32
    %c0_i32_0 = arith.constant 0 : i32
    %c0_i32_1 = arith.constant 0 : i32
    return %arg0, %c0_i32, %c0_i32_0 : i32, i32, i32
  }
  func.func @transform_1(%arg0: i32) -> (i32, i32) {
    %c0_i32 = arith.constant 0 : i32
    %c0_i32_0 = arith.constant 0 : i32
    %c0_i32_1 = arith.constant 0 : i32
    return %c0_i32, %c0_i32_0 : i32, i32
  }
  func.func @transform_2(%arg0: i32) -> (i32, i32) {
    %c0_i32 = arith.constant 0 : i32
    %c0_i32_0 = arith.constant 0 : i32
    return %arg0, %c0_i32 : i32, i32
  }
}

</mosaic_0001>

<bundles_post_ra>
// kernel: tpu_custom_call.1
= control target key start
LH: loop header
LB: loop body
LE: loop exit
PB: predicated region body
PF: predicated region fallthrough
CT: control target
= control target key end

     0   :  { %7 = vsyncpa [#allocation4], 0  ;;  %s196_s0 = inlined_call_operand.hbm [shape: f32[2,8,32], index: 0, kind: input, shape index: {}]   ;;  %s197_s1 = inlined_call_operand.vmem [shape: f32[1,32], index: 1, kind: input, shape index: {}]   ;;  %s198_s2 = inlined_call_operand.hbm [shape: f32[2,8], index: 2, kind: output, shape index: {}]  }
   0x1   :  { %8 = vsyncpa [#allocation5], 0  ;;  %s146_s9 = smov [#allocation3]   ;;  %s98_s13 = scalar_lea.hbm %s196_s0, 256 }
   0x2   :  { %s14_s10 = sshll.u32 %s146_s9, 4  ;;  %p99_p0 = scmp.ne.s32.totalorder %s196_s0, %s98_s13  ;;  %s15_s10 = int_to_ptr.vmem [resolvable:$true] %s14_s10 }
   0x3   :  { %p102_p1 = scmp.lt.u32.totalorder %s98_s13, %s196_s0 }
   0x5   :  { %p104_p2 = pnand %p102_p1, %p99_p0 }
   0x7   :  { %107 = shalt.err (!%p104_p2)
}
   0x8   :  { %s108_s18 = scalar_lea.vmem %s15_s10, 256  ;;  %p113_p4 = scmp.lt.s32.totalorder %s15_s10, %s15_s10 }
   0x9   :  { %p109_p3 = scmp.ne.s32.totalorder %s15_s10, %s108_s18  ;;  %p114_p5 = scmp.lt.s32.totalorder %s108_s18, %s108_s18 }
   0xb   :  { %p115_p6 = por %p114_p5, %p113_p4 }
   0xd   :  { %p116_p7 = pnand %p115_p6, %p109_p3 }
   0xf   :  { %119 = shalt.err (!%p116_p7)
}
  0x10   :  { %s147_s19 = smov 128   ;;  %s148_s20 = smov 8  }
  0x11   :  { %20 = dma.hbm_to_vmem [thread:$0]  %s196_s0, 256, %s15_s10, [#allocation4], %s147_s19, %s147_s19, %s148_s20  }
  0x12   :  { %142 = dma.done.wait [#allocation4], 256  }
  0x13   :  { %143 = vsyncadd [#allocation4], 4294967040  ;;  %v89_v0 = vld [vmem:[%s197_s1] ss:$0 sm:$0xff]  ;;  %v27_v1 = vld [vmem:[#allocation3] sm:$0xff]  ;;  %vm37_vm0 = vcmask 261120   ;;  %v46_v7 = vlaneseq }
  0x14   :  { %v28_v2 = vld [vmem:[#allocation3 + $0x8] sm:$0xff]  ;;  %v35_v3 = vmul.f32 %v89_v0, %v27_v1  ;;  %vm56_vm1 = vcmask 1041409   ;;  %vm59_vm2 = vcmask 58368   ;;  %s149_s0 = smov [#allocation6]  }
  0x15   :  { %v36_v4 = vmul.f32 %v89_v0, %v28_v2  ;;  %v47_v8 = vand.u32 127, %v46_v7  ;;  %v49_v9 = vshrl.u32 %v46_v7, 7  ;;  %s80_s1 = sshll.u32 %s149_s0, 4  ;;  %s81_s1 = int_to_ptr.vmem [resolvable:$true] %s80_s1 }
  0x16   :  { %v38_v5 = vsel %vm37_vm0, %v35_v3, 0.0  ;;  %s120_s25 = scalar_lea.vmem %s81_s1, 32  ;;  %p125_p9 = scmp.lt.s32.totalorder %s81_s1, %s81_s1 }
  0x17   :  { %39 = vadd.xlane.f32.xlu0 %v38_v5  ;;  %v41_v6 = vsel %vm37_vm0, %v36_v4, 0.0  ;;  %v50_v11 = vsub.s32 %v47_v8, %v49_v9  ;;  %p121_p8 = scmp.ne.s32.totalorder %s81_s1, %s120_s25  ;;  %p126_p10 = scmp.lt.s32.totalorder %s120_s25, %s120_s25 }
  0x19   :  { %p127_p11 = por %p126_p10, %p125_p9 }
  0x1b   :  { %42 = vadd.xlane.f32.xlu0 %v41_v6  ;;  %p128_p12 = pnand %p127_p11, %p121_p8 }
  0xa4   :  { %v40_v10 = vpop.xlane.xlu0 %39 }
  0xa5   :  { %v51_v13 = vrot.slane %v40_v10, %v50_v11 }
  0xa8   :  { %v43_v12 = vpop.xlane.xlu0 %42 }
  0xa9   :  { %v55_v14 = vrot.slane %v43_v12, %v50_v11 }
  0xab   :  { %v57_v15 = vsel %vm56_vm1, %v55_v14, %v51_v13 }
  0xac   :  { %60 = vst.msk [vmem:[#allocation2] sm:$0x3] %vm59_vm2, %v57_v15 }
  0xb3   :  { %v61_v16 = vld [vmem:[#allocation2] sm:$0x3] }
  0xb4   :  { %v62_v17 = vsel %vm59_vm2, %v61_v16, -inf }
  0xb5   :  { %63 = vmax.xlane.f32.xlu1 %v62_v17 }
 0x142   :  { %v64_v18 = vpop.xlane.xlu1 %63 }
 0x143   :  { %v65_v19 = vsub.f32 %v61_v16, %v64_v18 }
 0x145   :  { %v66_v20 = vmul.f32 1.442695, %v65_v19 }
 0x147   :  { %94 = vpow2.f32 %v66_v20 }
 0x151   :  { %v95_v21 = vpop.eup %94 }
 0x152   :  { %v68_v22 = vsel %vm59_vm2, %v95_v21, 0.0 }
 0x153   :  { %69 = vadd.xlane.f32.xlu1 %v68_v22 }
 0x1e0   :  { %v70_v23 = vpop.xlane.xlu1 %69 }
 0x1e1   :  { %96 = vrcp.f32 %v70_v23 }
 0x1eb   :  { %v97_v24 = vpop.eup %96 }
 0x1ec   :  { %v72_v25 = vmul.f32 %v97_v24, %v95_v21 }
 0x1ee   :  { %73 = vst.msk [vmem:[#allocation6] sm:$0x3] %vm59_vm2, %v72_v25 }
 0x1ef   :  { %131 = shalt.err (!%p128_p12)
}
 0x1f0   :  { %s132_s28 = scalar_lea.hbm %s198_s2, 32 }
 0x1f1   :  { %p133_p13 = scmp.ne.s32.totalorder %s198_s2, %s132_s28  ;;  %p136_p0 = scmp.lt.u32.totalorder %s132_s28, %s198_s2 }
 0x1f3   :  { %p138_p1 = pnand %p136_p0, %p133_p13 }
 0x1f5   :  { %141 = shalt.err (!%p138_p1)
}
 0x1f6   :  { %83 = dma.vmem_to_hbm [thread:$0]  %s81_s1, 32, %s198_s2, [#allocation5]  }
 0x1f7   :  { %144 = dma.done.wait [#allocation5], 32  }
 0x1f8   :  { %145 = vsyncadd [#allocation5], 4294967264 }
 0x1f9   :  { %87 = vsyncpa [#allocation4], 1 }
 0x1fa   :  { %88 = vsyncpa [#allocation5], 1 }

</bundles_post_ra>
